<compile_context>
chip_gen: v7x
topology: tpu7x:2x2x1
jax: 0.10.0
libtpu: 0.0.40
codegen_flags: <defaults>
</compile_context>

<pallas_src>
import functools

import jax
import jax.numpy as jnp
from jax.experimental import pallas as pl
from jax.experimental.pallas import tpu as pltpu


# ---------------------------------------------------------------------------
# Kernel 1: fused, padded QKV projection:  x @ [Wq*s | Wk | Wv] + [bq*s|bk|bv]
# ---------------------------------------------------------------------------
def _qkv_proj_kernel(x_ref, w_ref, b_ref, o_ref):
    x = x_ref[0]                                                     # (ts, E) bf16
    y = jnp.dot(x, w_ref[...], preferred_element_type=jnp.float32)   # MXU, f32 acc
    o_ref[0] = (y + b_ref[...]).astype(o_ref.dtype)                  # (ts, 3*Hp) bf16


# ---------------------------------------------------------------------------
# Kernel 2: flash attention over the packed bf16 QKV tensor
# ---------------------------------------------------------------------------
def _flash_attn_kernel(*args, hp, use_ones_col, has_bias):
    if has_bias:
        q_ref, k_ref, v_ref, bias_ref, *rest = args
    else:
        q_ref, k_ref, v_ref, *rest = args
        bias_ref = None
    if use_ones_col:
        o_ref, m_scr, acc_scr = rest
        l_scr = None
    else:
        o_ref, m_scr, acc_scr, l_scr = rest

    ki = pl.program_id(2)

    @pl.when(ki == 0)
    def _init():
        m_scr[...] = jnp.full_like(m_scr, -jnp.inf)
        acc_scr[...] = jnp.zeros_like(acc_scr)
        if l_scr is not None:
            l_scr[...] = jnp.zeros_like(l_scr)

    q = q_ref[0]                      # (tq, Hp) bf16, pre-scaled by 1/sqrt(H)
    k = k_ref[0]                      # (tk, Hp) bf16
    v = v_ref[0]                      # (tk, Hp) bf16 (last padded column == 1)

    # Scores (tq, tk): contract the head dim of both operands — no explicit k.T.
    s = jax.lax.dot_general(q, k, dimension_numbers=(((1,), (1,)), ((), ())),
                            preferred_element_type=jnp.float32)
    if bias_ref is not None:
        s = s + bias_ref[0]           # additive padding-mask bias (1, tk)

    # Online softmax update; normalization deferred to the finalize.
    m_prev = m_scr[...]
    m_new = jnp.maximum(m_prev, jnp.max(s, axis=-1, keepdims=True))
    alpha = jnp.exp(m_prev - m_new)                        # (tq, 1) f32 — tiny
    p = jnp.exp((s - m_new).astype(jnp.bfloat16))          # bf16 exp (EUP relief)
    if l_scr is not None:
        l_scr[...] = alpha * l_scr[...] + jnp.sum(
            p.astype(jnp.float32), axis=-1, keepdims=True)
    acc_scr[...] = alpha * acc_scr[...] + jnp.dot(
        p, v, preferred_element_type=jnp.float32)
    m_scr[...] = m_new

    @pl.when(ki == pl.num_programs(2) - 1)
    def _finalize():
        # Denominator: free ones-column of V (accumulated through the PV
        # matmul) when H < Hp; explicit running sum otherwise.
        l = acc_scr[:, hp - 1:hp] if use_ones_col else l_scr[...]
        inv_l = pl.reciprocal(l, approx=True)              # EUP vrcp
        o_ref[0] = (acc_scr[...] * inv_l).astype(o_ref.dtype)   # lane-dense store


# ---------------------------------------------------------------------------
# Wrapper
# ---------------------------------------------------------------------------
def _pick_tile(s, pref):
    """Largest power-of-two-ish tile <= pref that divides s (fallback: full s)."""
    if s <= pref:
        return s
    t = pref
    while t >= 8 and s % t != 0:
        t //= 2
    return t if (t >= 8 and s % t == 0) else s


def _tile_prefs():
    """Per-generation tile preferences (v5e: 1 vst slot, 16 MiB scoped VMEM)."""
    try:
        kind = jax.devices()[0].device_kind.lower()
    except Exception:
        kind = ""
    if "v5 lite" in kind or "v5e" in kind or "v5lite" in kind:
        return 128, 256
    return 256, 512


def _const_spec(shape):
    """BlockSpec for a grid-constant operand; single pipeline buffer."""
    index_map = lambda *_: (0,) * len(shape)
    try:
        # Constant index_map -> the second double-buffer is never used.
        return pl.BlockSpec(shape, index_map, pipeline_mode=pl.Buffered(1))
    except Exception:  # older jax without pipeline_mode support
        return pl.BlockSpec(shape, index_map)


def attention_head(x, wq, bq, wk, bk, wv, bv, mask=None, *, tq=None, tk=None):
    """x: (B, S, E) float32.
    wq/wk/wv: PyTorch-style (H, E);  bq/bk/bv: (H,).
    mask: optional (B, S) {0,1} (1 = keep).  Returns (B, S, H) in x.dtype."""
    B, S, E = x.shape
    H = wq.shape[0]
    Hp = max(128, ((H + 127) // 128) * 128)        # lane-dense padded head dim
    use_ones_col = H < Hp                          # free denominator column in V
    has_bias = mask is not None

    tq_pref, tk_pref = _tile_prefs()
    tq = _pick_tile(S, tq_pref) if tq is None else tq
    tk = _pick_tile(S, tk_pref) if tk is None else tk
    assert S % tq == 0 and S % tk == 0, (S, tq, tk)
    ts = _pick_tile(S, 256)                        # projection row tile

    f32, bf16 = jnp.float32, jnp.bfloat16
    scale = float(H) ** -0.5

    # PyTorch Linear stores W as (out, in): y = x @ W.T + b.  Pack [Q|K|V] into
    # one (E, 3*Hp) operand, fold the 1/sqrt(H) scale into the Q columns, and
    # zero-pad head dims to Hp.  Padded q/k columns contribute 0 to the scores;
    # padded v columns give 0 output columns (sliced off below), except the
    # last V column which is set to 1 (via its bias) so the PV matmul also
    # accumulates the softmax denominator.
    w_qkv = (jnp.zeros((E, 3 * Hp), f32)
             .at[:, 0:H].set(wq.T * scale)
             .at[:, Hp:Hp + H].set(wk.T)
             .at[:, 2 * Hp:2 * Hp + H].set(wv.T)).astype(bf16)
    b_qkv = (jnp.zeros((1, 3 * Hp), f32)
             .at[:, 0:H].set(bq * scale)
             .at[:, Hp:Hp + H].set(bk)
             .at[:, 2 * Hp:2 * Hp + H].set(bv))
    if use_ones_col:
        b_qkv = b_qkv.at[0, 3 * Hp - 1].set(1.0)

    x_bf16 = x.astype(bf16)                        # halve x HBM/VMEM traffic

    # ---- pass 1: projection, computed once per row (not once per q tile) ---
    proj_cost = pl.CostEstimate(
        flops=2 * B * S * E * 3 * Hp,
        transcendentals=0,
        bytes_accessed=int(x_bf16.size * 2 + w_qkv.size * 2 + b_qkv.size * 4
                           + B * S * 3 * Hp * 2))
    qkv = pl.pallas_call(
        _qkv_proj_kernel,
        out_shape=jax.ShapeDtypeStruct((B, S, 3 * Hp), bf16),
        grid_spec=pltpu.PrefetchScalarGridSpec(
            num_scalar_prefetch=0,
            grid=(B, S // ts),
            in_specs=[
                pl.BlockSpec((1, ts, E), lambda b, si: (b, si, 0)),   # x rows
                _const_spec((E, 3 * Hp)),                              # W_qkv
                _const_spec((1, 3 * Hp)),                              # b_qkv
            ],
            out_specs=pl.BlockSpec((1, ts, 3 * Hp), lambda b, si: (b, si, 0)),
        ),
        compiler_params=pltpu.CompilerParams(
            dimension_semantics=("parallel", "parallel"),
            vmem_limit_bytes=32 * 1024 * 1024),
        cost_estimate=proj_cost,
    )(x_bf16, w_qkv, b_qkv)

    # ---- pass 2: flash attention over the packed QKV tensor ----------------
    in_specs = [
        pl.BlockSpec((1, tq, Hp), lambda b, qi, ki: (b, qi, 0)),   # Q tile
        pl.BlockSpec((1, tk, Hp), lambda b, qi, ki: (b, ki, 1)),   # K tile
        pl.BlockSpec((1, tk, Hp), lambda b, qi, ki: (b, ki, 2)),   # V tile
    ]
    inputs = [qkv, qkv, qkv]
    if has_bias:
        bias = jnp.where(mask.astype(bool)[:, None, :], 0.0, -1e9).astype(f32)
        in_specs.append(pl.BlockSpec((1, 1, tk), lambda b, qi, ki: (b, 0, ki)))
        inputs.append(bias)

    scratch = [pltpu.VMEM((tq, 1), f32),            # running max
               pltpu.VMEM((tq, Hp), f32)]           # output accumulator
    if not use_ones_col:
        scratch.append(pltpu.VMEM((tq, 1), f32))    # explicit denominator

    n_q_tiles = S // tq
    attn_cost = pl.CostEstimate(
        flops=4 * B * S * S * Hp,
        transcendentals=B * S * S,
        bytes_accessed=int(B * S * Hp * 2                       # q stream
                           + 2 * n_q_tiles * B * S * Hp * 2     # k/v re-reads
                           + (n_q_tiles * B * S * 4 if has_bias else 0)
                           + B * S * Hp * x.dtype.itemsize))    # padded output

    kernel = functools.partial(_flash_attn_kernel, hp=Hp,
                               use_ones_col=use_ones_col, has_bias=has_bias)
    out_padded = pl.pallas_call(
        kernel,
        out_shape=jax.ShapeDtypeStruct((B, S, Hp), x.dtype),
        grid_spec=pltpu.PrefetchScalarGridSpec(
            num_scalar_prefetch=0,
            grid=(B, S // tq, S // tk),
            in_specs=in_specs,
            out_specs=pl.BlockSpec((1, tq, Hp), lambda b, qi, ki: (b, qi, 0)),
            scratch_shapes=scratch,
        ),
        compiler_params=pltpu.CompilerParams(
            dimension_semantics=("parallel", "parallel", "arbitrary"),
            vmem_limit_bytes=32 * 1024 * 1024),
        cost_estimate=attn_cost,
    )(*inputs)

    # TODO(synk): for H << 128 a multi-head variant packing heads into the
    # 128-lane slot would avoid the Hp/H padding waste; single-head module here.
    return out_padded[..., :H]


# ---------------------------------------------------------------------------
# Pure-JAX reference (mirrors the PyTorch forward, eval-mode dropout)
# ---------------------------------------------------------------------------
def _reference(x, wq, bq, wk, bk, wv, bv, mask, head_size):
    q = x @ wq.T + bq
    k = x @ wk.T + bk
    v = x @ wv.T + bv
    attn = jnp.einsum("bqd,bkd->bqk", q, k) * head_size ** (-0.5)
    if mask is not None:
        pad = (mask > 0)[:, None, :]
        attn = jnp.where(pad, attn, -1e9)
    attn = jax.nn.softmax(attn, axis=-1)
    return attn @ v


if __name__ == "__main__":
    B, S, E, H = 2, 8, 32, 16          # batch, seq, embed_dim, head_size
    key = jax.random.PRNGKey(0)
    kx, kq, kbq, kk, kbk, kv, kbv, km = jax.random.split(key, 8)

    x = jax.random.normal(kx, (B, S, E), dtype=jnp.float32)
    # Deterministic synthetic parameters (PyTorch Linear shapes: (out, in))
    bound = 1.0 / (E ** 0.5)
    wq = jax.random.uniform(kq, (H, E), minval=-bound, maxval=bound, dtype=jnp.float32)
    bq = jax.random.uniform(kbq, (H,), minval=-bound, maxval=bound, dtype=jnp.float32)
    wk = jax.random.uniform(kk, (H, E), minval=-bound, maxval=bound, dtype=jnp.float32)
    bk = jax.random.uniform(kbk, (H,), minval=-bound, maxval=bound, dtype=jnp.float32)
    wv = jax.random.uniform(kv, (H, E), minval=-bound, maxval=bound, dtype=jnp.float32)
    bv = jax.random.uniform(kbv, (H,), minval=-bound, maxval=bound, dtype=jnp.float32)
    # Padding mask: 1 = keep, 0 = pad (last two positions of batch 1 padded)
    mask = jnp.ones((B, S), dtype=jnp.int32).at[1, -2:].set(0)

    out = attention_head(x, wq, bq, wk, bk, wv, bv, mask)
    out = jax.block_until_ready(out)

    ref = _reference(x, wq, bq, wk, bk, wv, bv, mask, H)
    assert out.shape == (B, S, H), out.shape
    # bf16 MXU inputs + bf16 exp + approx reciprocal -> relaxed tolerance.
    err = float(jnp.max(jnp.abs(out - ref)))
    assert jnp.allclose(out, ref, atol=2e-2, rtol=2e-2), err

    # Also exercise the specialized no-mask kernel variant.
    out_nm = jax.block_until_ready(attention_head(x, wq, bq, wk, bk, wv, bv))
    ref_nm = _reference(x, wq, bq, wk, bk, wv, bv, None, H)
    err_nm = float(jnp.max(jnp.abs(out_nm - ref_nm)))
    assert jnp.allclose(out_nm, ref_nm, atol=2e-2, rtol=2e-2), err_nm

    print("KERNEL_OK")
</pallas_src>

<mosaic_0001>
module attributes {stable_mosaic.version = 11 : i64} {
  func.func @_qkv_proj_kernel(%arg0: i32, %arg1: i32, %arg2: memref<1x8x32xbf16, #tpu.memory_space<vmem>>, %arg3: memref<32x384xbf16, #tpu.memory_space<vmem>>, %arg4: memref<1x384xf32, #tpu.memory_space<vmem>>, %arg5: memref<1x8x384xbf16, #tpu.memory_space<vmem>>) attributes {dimension_semantics = [#tpu.dimension_semantics<parallel>, #tpu.dimension_semantics<parallel>], iteration_bounds = array<i64: 2, 1>, scalar_prefetch = 0 : i64, scratch_operands = 0 : i64, tpu.core_type = #tpu.core_type<tc>, window_params = [{transform_indices = @transform_0, window_bounds = array<i64: 1, 8, 32>}, {pipeline_mode = #tpu.pipeline_mode<synchronous>, transform_indices = @transform_1, window_bounds = array<i64: 32, 384>}, {pipeline_mode = #tpu.pipeline_mode<synchronous>, transform_indices = @transform_2, window_bounds = array<i64: 1, 384>}, {transform_indices = @transform_3, window_bounds = array<i64: 1, 8, 384>}]} {
    %c0 = arith.constant 0 : index
    %c0_0 = arith.constant 0 : index
    %c0_1 = arith.constant 0 : index
    %0 = vector.load %arg2[%c0, %c0_0, %c0_1] : memref<1x8x32xbf16, #tpu.memory_space<vmem>>, vector<1x8x32xbf16>
    %1 = vector.shape_cast %0 : vector<1x8x32xbf16> to vector<8x32xbf16>
    %c0_2 = arith.constant 0 : index
    %c0_3 = arith.constant 0 : index
    %2 = vector.load %arg3[%c0_2, %c0_3] : memref<32x384xbf16, #tpu.memory_space<vmem>>, vector<32x384xbf16>
    %cst = arith.constant dense<0.000000e+00> : vector<8x384xf32>
    %3 = tpu.matmul %1, %2, %cst {dimension_numbers = #tpu.dot_dimension_numbers<[1], [0], [0], [1], [0, 0, 1, 1], [], []>} : vector<8x32xbf16>, vector<32x384xbf16>, vector<8x384xf32> -> vector<8x384xf32>
    %c0_4 = arith.constant 0 : index
    %c0_5 = arith.constant 0 : index
    %4 = vector.load %arg4[%c0_4, %c0_5] : memref<1x384xf32, #tpu.memory_space<vmem>>, vector<1x384xf32>
    %5 = vector.broadcast %4 : vector<1x384xf32> to vector<8x384xf32>
    %6 = arith.addf %3, %5 : vector<8x384xf32>
    %7 = arith.truncf %6 : vector<8x384xf32> to vector<8x384xbf16>
    %c0_6 = arith.constant 0 : index
    %c0_7 = arith.constant 0 : index
    %c0_8 = arith.constant 0 : index
    %8 = vector.load %arg5[%c0_6, %c0_7, %c0_8] : memref<1x8x384xbf16, #tpu.memory_space<vmem>>, vector<1x8x384xbf16>
    %9 = vector.shape_cast %8 : vector<1x8x384xbf16> to vector<8x384xbf16>
    %10 = vector.shape_cast %7 : vector<8x384xbf16> to vector<1x8x384xbf16>
    tpu.vector_store %arg5[%c0_6, %c0_7, %c0_8], %10 {strides = array<i32>} : memref<1x8x384xbf16, #tpu.memory_space<vmem>>, vector<1x8x384xbf16>,
    return
  }
  func.func @transform_0(%arg0: i32, %arg1: i32) -> (i32, i32, i32) {
    %c0_i32 = arith.constant 0 : i32
    %c0_i32_0 = arith.constant 0 : i32
    return %arg0, %arg1, %c0_i32 : i32, i32, i32
  }
  func.func @transform_1(%arg0: i32, %arg1: i32) -> (i32, i32) {
    %c0_i32 = arith.constant 0 : i32
    %c0_i32_0 = arith.constant 0 : i32
    %c0_i32_1 = arith.constant 0 : i32
    return %c0_i32, %c0_i32_0 : i32, i32
  }
  func.func @transform_2(%arg0: i32, %arg1: i32) -> (i32, i32) {
    %c0_i32 = arith.constant 0 : i32
    %c0_i32_0 = arith.constant 0 : i32
    %c0_i32_1 = arith.constant 0 : i32
    return %c0_i32, %c0_i32_0 : i32, i32
  }
  func.func @transform_3(%arg0: i32, %arg1: i32) -> (i32, i32, i32) {
    %c0_i32 = arith.constant 0 : i32
    %c0_i32_0 = arith.constant 0 : i32
    return %arg0, %arg1, %c0_i32 : i32, i32, i32
  }
}

</mosaic_0001>

<bundles_post_ra>
// kernel: tpu_custom_call.1
= control target key start
LH: loop header
LB: loop body
LE: loop exit
PB: predicated region body
PF: predicated region fallthrough
CT: control target
= control target key end

     0   :  { %8 = vsyncpa [#allocation3], 0  ;;  %s1002_s0 = inlined_call_operand.hbm [shape: bf16[2,8,32], index: 0, kind: input, shape index: {}]   ;;  %s1003_s1 = inlined_call_operand.hbm [shape: bf16[32,384], index: 1, kind: input, shape index: {}]   ;;  %s1004_s2 = inlined_call_operand.vmem [shape: f32[1,384], index: 2, kind: input, shape index: {}]   ;;  %s1005_s3 = inlined_call_operand.hbm [shape: bf16[2,8,384], index: 3, kind: output, shape index: {}]  }
   0x1   :  { %10 = vsyncpa [#allocation3 + $0x1], 0 }
   0x2   :  { %11 = vsyncpa [#allocation6], 0 }
   0x3   :  { %12 = vsyncpa [#allocation4], 0 }
   0x4   :  { %14 = vsyncpa [#allocation4 + $0x1], 0  ;;  %s784_s12 = smov 0   ;;  %s786_s13 = smov 0  }
   0x5   :  { %s788_s14 = smov 0   ;;  %s790_s15 = smov 0  }
   0x6   :  { %s792_s16 = smov 0   ;;  %s794_s17 = smov 0  }
   0x7 LB: > { %s486_s18 = sadd.s32 4294967295, %s754_s17   ;;  %s487_s19 = sadd.s32 4294967294, %s754_s17   ;;  %s754_s17 = sphi %s794_s17, %s20_s17   ;;  %s750_s16 = sphi %s792_s16, %s1029_s16   ;;  %s746_s15 = sphi %s790_s15, %s1028_s15   ;;  %s742_s14 = sphi %s788_s14, %s1027_s14   ;;  %s738_s13 = sphi %s786_s13, %s1026_s13   ;;  %s734_s12 = sphi %s784_s12, %s1025_s12  }
   0x8   : > { %p54_p0 = scmp.ne.s32.totalorder %s738_s13, %s734_s12  ;;  %p818_p1 = scmp.eq.s32.totalorder %s486_s18, 0 }
   0x9   : > { %p822_p2 = scmp.eq.s32.totalorder %s486_s18, 1  ;;  %p128_p3 = scmp.eq.s32.totalorder %s487_s19, 1 }
   0xa   : > { %s1010_s20 = scalar_select %p818_p1, 1, 0 }
   0xb   : > { %s1011_s21 = scalar_select %p822_p2, 1, 0 }
   0xc   : > { %p828_p4 = por %p818_p1, %p54_p0  ;;  %p488_p5 = scmp.ge.s32.totalorder %s754_s17, 1 }
   0xd   : > { %p833_p6 = por %p128_p3, %p54_p0  ;;  %p135_p7 = scmp.lt.s32.totalorder %s754_s17, 3 }
   0xe   : > { %s1012_s22 = scalar_select %p828_p4, 1, 0 }
   0xf   : > { %s1013_s23 = scalar_select %p833_p6, 1, 0 }
  0x10   : > { %p838_p8 = pnand %p488_p5, %p135_p7  ;;  %s756_s25 = smov [#allocation5]  }
  0x11   : > { %s147_s26 = sshll.u32 %s756_s25, 4  ;;  %s32_s28 = sadd.s32 1, %s750_s16  ;;  %s148_s26 = int_to_ptr.vmem [resolvable:$true] %s147_s26 }
  0x12   : > { %s1014_s24 = scalar_select %p838_p8, 1, 0 }
  0x13   : > { %p532_p9 = pneg %p838_p8  ;;  %s610_s4 = scalar_lea.hbm %s1003_s1, 768 }
  0x14   : > { %p611_p12 = scmp.ne.s32.totalorder %s1003_s1, %s610_s4  ;;  %p617_p5 = scmp.lt.u32.totalorder %s610_s4, %s1003_s1 }
  0x15   : > { %p847_p11 = pnand %p532_p9, %p818_p1 }
  0x17   : > { %p612_p13 = pneg %p847_p11 }
  0x19   : > { %p613_p0 = pnand %p612_p13, %p611_p12 }
  0x1b   : > { %p614_p3 = pneg %p613_p0 }
  0x1d   : > { %p619_p7 = pnand %p617_p5, %p614_p3 }
  0x1f   : > { %622 = shalt.err (!%p619_p7)
}
  0x20   : > { %s623_s9 = scalar_lea.vmem %s148_s26, 768  ;;  %p631_p1 = scmp.lt.s32.totalorder %s148_s26, %s148_s26 }
  0x21   : > { %p624_p9 = scmp.ne.s32.totalorder %s148_s26, %s623_s9  ;;  %p632_p4 = scmp.lt.s32.totalorder %s623_s9, %s623_s9 }
  0x23   : > { %p626_p10 = pnand %p624_p9, %p612_p13  ;;  %p633_p8 = por %p632_p4, %p631_p1 }
  0x25   : > { %p627_p6 = pneg %p626_p10 }
  0x27   : > { %p634_p2 = pnand %p633_p8, %p627_p6 }
  0x29   : > { %637 = shalt.err (!%p634_p2)
}
  0x2a   : > { %s757_s10 = smov 192   ;;  %s758_s11 = smov 12  }
  0x2b   : > { %535 = dma.hbm_to_vmem [thread:$0]  (!%p847_p11), %s1003_s1, 768, %s148_s26, [#allocation6], %s757_s10, %s757_s10, %s758_s11  }
  0x2c   : > { %p34_p1 = scmp.ge.s32.totalorder %s32_s28, 2  ;;  %s41_s25 = sadd.s32 1, %s742_s14 }
  0x2d   : > { %p48_p2 = scmp.ne.s32.totalorder %s742_s14, %s738_s13  ;;  %p49_p4 = scmp.eq.s32.totalorder %s754_s17, 0 }
  0x2e   : > { %s1031_s28 = smov (%p34_p1, %s32_s28), 0  ;;  %p1017_p8 = scmp.ne.s32.totalorder %s1011_s21, 0 }
  0x2f   : > { %p874_p6 = por %p49_p4, %p48_p2  ;;  %s36_s27 = ssub.s32 %s750_s16, %s1031_s28 }
  0x30   : > { %p880_p10 = por %p1017_p8, %p48_p2  ;;  %p545_p12 = scmp.lt.s32.totalorder %s754_s17, 2 }
  0x31   : > { %p39_p11 = scmp.eq.s32.totalorder %s36_s27, 0  ;;  %s164_s26 = sand.u32 1, %s742_s14  }
  0x32   : > { %s491_s4 = sshll.u32 %s164_s26, 2  ;;  %s492_s6 = sshll.u32 %s750_s16, 6 }
  0x33   : > { %s889_s5 = scalar_select %p39_p11, %s742_s14, %s41_s25  }
  0x34   : > { %s895_s9 = scalar_lea.hbm %s1002_s0, %s492_s6  ;;  %s168_s21 = scalar_lea.vmem [#allocation2], %s491_s4 }
  0x35   : > { %s176_s10 = sshll.u32 %s168_s21, 4  ;;  %p901_p13 = pnand %p545_p12, %p874_p6  ;;  %s897_s10 = int_to_ptr.vmem [resolvable:$true] %s176_s10 }
  0x36   : > { %s165_s18 = scalar_lea.sflag [#allocation3], %s164_s26  ;;  %s638_s19 = scalar_lea.hbm %s895_s9, 64 }
  0x37   : > { %p639_p0 = scmp.ne.s32.totalorder %s895_s9, %s638_s19  ;;  %p640_p3 = pneg %p901_p13 }
  0x38   : > { %s643_s4 = scalar_lea.hbm %s1002_s0, 128  ;;  %p644_p9 = scmp.lt.u32.totalorder %s895_s9, %s1002_s0 }
  0x39   : > { %p641_p5 = pnand %p640_p3, %p639_p0  ;;  %p645_p1 = scmp.lt.u32.totalorder %s643_s4, %s638_s19 }
  0x3a   : > { %p647_p4 = scmp.lt.u32.totalorder %s638_s19, %s895_s9 }
  0x3b   : > { %p642_p7 = pneg %p641_p5  ;;  %p646_p2 = por %p645_p1, %p644_p9 }
  0x3d   : > { %p648_p6 = por %p647_p4, %p646_p2 }
  0x3f   : > { %p649_p8 = pnand %p648_p6, %p642_p7 }
  0x41   : > { %652 = shalt.err (!%p649_p8)
}
  0x42   : > { %s653_s26 = scalar_lea.vmem %s897_s10, 64  ;;  %s759_s7 = smov [#allocation2]  }
  0x43   : > { %p654_p12 = scmp.ne.s32.totalorder %s897_s10, %s653_s26  ;;  %s658_s8 = sshll.u32 %s759_s7, 4  ;;  %s659_s8 = int_to_ptr.vmem [resolvable:$false] %s658_s8 }
  0x44   : > { %s660_s21 = scalar_lea.vmem %s659_s8, 128  ;;  %p661_p5 = scmp.lt.s32.totalorder %s897_s10, %s659_s8 }
  0x45   : > { %p656_p11 = pnand %p654_p12, %p640_p3  ;;  %p662_p9 = scmp.lt.s32.totalorder %s660_s21, %s653_s26 }
  0x47   : > { %p657_p0 = pneg %p656_p11  ;;  %p663_p1 = por %p662_p9, %p661_p5 }
  0x49   : > { %p664_p2 = pnand %p663_p1, %p657_p0 }
  0x4b   : > { %667 = shalt.err (!%p664_p2)
}
  0x4c   : > { %539 = dma.hbm_to_vmem [thread:$0]  (!%p901_p13), %s895_s9, 64, %s897_s10, %s165_s18  }
  0x4d   : > { %p1020_p7 = scmp.ne.s32.totalorder %s1014_s24, 0 }
  0x4e   : > { %s933_s19 = sand.u32 (!%p1020_p7), 1, %s738_s13   ;;  %p1021_p3 = scmp.ne.s32.totalorder (!%p1020_p7), %s1012_s22, 0 }
  0x4f   : > { %185 = sbr.rel (%p1020_p7) target bundleno = 331 (0x14b), region = 32  ;;  %s494_s25 = sshll.u32 (!%p1020_p7), %s933_s19, 2 }
  0x50   : > { %s188_s27 = scalar_lea.sflag (!%p1020_p7), [#allocation3], %s933_s19  ;;  %s191_s4 = scalar_lea.vmem (!%p1020_p7), [#allocation2], %s494_s25 }
  0x56   : > { %721 = dma.done.wait (%p1021_p3), %s188_s27, 64  }
  0x57   : > { %723 = vsyncadd (%p1021_p3), %s188_s27, 4294967232  ;;  %p1022_p4 = scmp.ne.s32.totalorder %s1010_s20, 0 }
  0x59   : > { %725 = dma.done.wait (%p1022_p4), [#allocation6], 768  }
  0x5a   : > { %727 = vsyncadd (%p1022_p4), [#allocation6], 4294966528  ;;  %v760_v0 = vmov 0.0   ;;  %vm761_vm0 = vmmov 0   ;;  %v762_v1 = vmov 0   ;;  %vm277_vm1 = vcmask 261120  }
  0x5b   : > { %514 = vmatprep.subr.bf16.mxu1 %v760_v0  ;;  %518 = vmatprep.mubr.msk.bf16.mxu1 %vm761_vm0, %v760_v0  ;;  %v602_v2 = vld [vmem:[#allocation5 + $0x4] ss:$12 sps:$4 sm:$0xff]   ;;  %v604_v3 = vld [vmem:[#allocation5 + $0x8] ss:$12 sps:$4 sm:$0xff]   ;;  %v605_v4 = vld [vmem:[#allocation5] ss:$12 sps:$4 sm:$0xff]   ;;  %v230_v9 = vlaneseq }
  0x5c   : > { %313 = vmatprep.mubr.bf16.mxu0 %v762_v1  ;;  %281 = vmatprep.subr.bf16.mxu0 %v602_v2  ;;  %v606_v5 = vld [vmem:[#allocation5 + $0x1c] ss:$12 sps:$4 sm:$0xff]   ;;  %v608_v6 = vld [vmem:[#allocation5 + $0x20] ss:$12 sps:$4 sm:$0xff]   ;;  %v609_v7 = vld [vmem:[#allocation5 + $0x18] ss:$12 sps:$4 sm:$0xff]  }
  0x5d   : > { %515 = vmatpush3.bf16.msra.mxu1 %v604_v3  ;;  %282 = vmatpush1.bf16.msra.mxu0 %v605_v4  ;;  %v219_v8 = vld [vmem:[%s191_s4] sm:$0xf]  ;;  %v231_v10 = vshrl.u32 %v230_v9, 7  ;;  %s522_s24 = smul.u32 12, %s933_s19  ;;  %s763_s7 = smov [#allocation7]  }
  0x5e   : > { %516 = vmatprep.subr.bf16.mxu1 %v760_v0  ;;  %283 = vmatprep.subr.bf16.mxu0 %v606_v5  ;;  %v228_v12 = vld [vmem:[%s1004_s2] sm:$0x7]  ;;  %s523_s9 = smul.u32 192, %s746_s15  ;;  %s378_s15 = scalar_lea.sflag [#allocation4], %s933_s19 }
  0x5f   : > { %v240_v11 = vsub.s32 2, %v231_v10  ;;  %v232_v13 = vsub.s32 0, %v231_v10  ;;  %v236_v14 = vsub.s32 1, %v231_v10  ;;  %s217_s10 = scalar_lea.vmem [#allocation7], %s522_s24  ;;  %s672_s8 = sshll.u32 %s763_s7, 4  ;;  %s673_s8 = int_to_ptr.vmem [resolvable:$false] %s672_s8 }
  0x60   : > { %s394_s11 = sshll.u32 %s217_s10, 4  ;;  %s953_s6 = scalar_lea.hbm %s1005_s3, %s523_s9  ;;  %s955_s11 = int_to_ptr.vmem [resolvable:$true] %s394_s11 }
  0x61   : > { %517 = vmatpush3.bf16.msra.mxu1 %v608_v6  ;;  %284 = vmatpush1.bf16.msra.mxu0 %v609_v7  ;;  %v241_v15 = vrot.slane %v228_v12, %v240_v11  ;;  %v233_v16 = vrot.slane %v228_v12, %v232_v13  ;;  %v237_v17 = vrot.slane %v228_v12, %v236_v14  ;;  %s668_s26 = scalar_lea.vmem %s955_s11, 192  ;;  %s674_s21 = scalar_lea.vmem %s673_s8, 384 }
  0x62   : > { %p669_p13 = scmp.ne.s32.totalorder %s955_s11, %s668_s26  ;;  %p675_p12 = scmp.lt.s32.totalorder %s955_s11, %s673_s8 }
  0x63   : > { %p676_p11 = scmp.lt.s32.totalorder %s674_s21, %s668_s26 }
  0x64   : > { %519 = vmatmul.mubr.msk.bf16.vlgmr.msra.gmra.mrb[0].mxu1 %vm277_vm1, %v219_v8  ;;  %502 = vmatmul.mubr.msk.bf16.vlgmr.msra.gmra.mrb[0].mxu0 %vm277_vm1, %v219_v8  ;;  %p670_p6 = pnand %p669_p13, %p880_p10 }
  0x65   : > { %p677_p0 = por %p676_p11, %p675_p12 }
  0x66   : > { %p671_p8 = pneg %p670_p6 }
  0x68   : > { %p678_p5 = pnand %p677_p0, %p671_p8 }
 0x137   : > { %v356_v18 = vpop.f32.mrb[0].mxu1  ;;  %v315_v20 = vpop.f32.mrb[0].mxu0 }
 0x138   : > { %v357_v19 = vadd.f32 %v356_v18, %v241_v15  ;;  %v520_v21 = vpop.f32.mrb[1].mxu1  ;;  %v316_v22 = vadd.f32 %v315_v20, %v233_v16  ;;  %v317_v23 = vpop.f32.mrb[1].mxu0 }
 0x139   : > { %v359_v24 = vpop.f32.mrb[2].mxu1  ;;  %v318_v26 = vadd.f32 %v317_v23, %v237_v17  ;;  %v319_v27 = vpop.f32.mrb[2].mxu0 }
 0x13a   : > { %v510_v25 = vpack.c.bf16 %v357_v19, %v357_v19  ;;  %v521_v28 = vpop.f32.mrb[3].mxu1  ;;  %v320_v29 = vpop.f32.mrb[3].mxu0 }
 0x13b   : > { %v509_v30 = vpack.c.bf16 %v318_v26, %v316_v22 }
 0x13c   : > { %376 = vst [vmem:[%s217_s10 + $0x8] sm:$0xf] %v510_v25 }
 0x13d   : > { %375 = vst [vmem:[%s217_s10] sm:$0xff] %v509_v30 }
 0x13e   : > { %681 = shalt.err (!%p678_p5)
}
 0x13f   : > { %s682_s19 = scalar_lea.hbm %s953_s6, 192  ;;  %s686_s4 = scalar_lea.hbm %s1005_s3, 384 }
 0x140   : > { %p683_p9 = scmp.ne.s32.totalorder %s953_s6, %s682_s19  ;;  %p687_p7 = scmp.lt.u32.totalorder %s953_s6, %s1005_s3 }
 0x141   : > { %p688_p3 = scmp.lt.u32.totalorder %s686_s4, %s682_s19  ;;  %p690_p13 = scmp.lt.u32.totalorder %s682_s19, %s953_s6 }
 0x142   : > { %p684_p1 = pnand %p683_p9, %p880_p10 }
 0x143   : > { %p689_p4 = por %p688_p3, %p687_p7 }
 0x144   : > { %p685_p2 = pneg %p684_p1 }
 0x145   : > { %p691_p6 = por %p690_p13, %p689_p4 }
 0x147   : > { %p692_p8 = pnand %p691_p6, %p685_p2 }
 0x149   : > { %695 = shalt.err (!%p692_p8)
}
 0x14a   : > { %530 = dma.vmem_to_hbm [thread:$0]  (%p880_p10), %s955_s11, 192, %s953_s6, %s378_s15  }
 0x14b PF: > { %s406_s24 = sand.u32 1, %s734_s12   ;;  %p1023_p12 = scmp.ne.s32.totalorder %s1013_s23, 0 }
 0x14c   : > { %p1024_p11 = scmp.ge.s32.totalorder %s754_s17, 2  ;;  %s407_s9 = scalar_lea.sflag [#allocation4], %s406_s24 }
 0x14e   : > { %p541_p0 = pnand %p1024_p11, %p1023_p12 }
 0x150   : > { %729 = dma.done.wait (!%p541_p0), %s407_s9, 192  }
 0x151   : > { %731 = vsyncadd (!%p541_p0), %s407_s9, 4294967104  ;;  %s20_s17 = sadd.s32 1, %s754_s17   ;;  %s1025_s12 = smov %s738_s13 }
 0x152   : > { %p17_p5 = scmp.ge.s32.totalorder %s20_s17, 4   ;;  %s1026_s13 = smov %s742_s14 }
 0x153   : > { %s1027_s14 = smov %s889_s5  ;;  %s1028_s15 = smov %s750_s16 }
 0x154   : > { %s1029_s16 = smov %s1031_s28  ;;  %19 = sbr.rel (!%p17_p5) target bundleno = 7 (0x7), region = 81 }
 0x15b   :  { %412 = vsyncpa [#allocation3], 1 }
 0x15c   :  { %414 = vsyncpa [#allocation3 + $0x1], 1 }
 0x15d   :  { %415 = vsyncpa [#allocation6], 1 }
 0x15e   :  { %416 = vsyncpa [#allocation4], 1 }
 0x15f   :  { %418 = vsyncpa [#allocation4 + $0x1], 1 }

</bundles_post_ra>
